<compile_context>
chip_gen: v5e
topology: v5e:2x2
jax: 0.10.0
libtpu: 0.0.40
codegen_flags: <defaults>
</compile_context>

<pallas_src>
import jax
import jax.numpy as jnp
from jax import lax
from jax.experimental import pallas as pl
from jax.experimental.pallas import tpu as pltpu

ALPHA = 0.8          # config['alpha']
BN_EPS = 1e-5        # nn.BatchNorm1d default eps
NORM_EPS = 1e-12     # F.normalize default eps

MAX_TILE = 512       # max output tile (rows x lanes); lane-dense, MXU-friendly
LANE = 128           # feature-dim padding granularity
HC_RESIDENT_MAX_BYTES = 8 * 1024 * 1024   # keep h VMEM-resident below this


def _round_up(v, m):
    return ((v + m - 1) // m) * m


def _vmem_limit(estimate_bytes):
    """Footprint-derived VMEM cap, with headroom under v7x's 64 MiB budget."""
    return int(min(max(2 * estimate_bytes + (4 << 20), 32 << 20), 56 << 20))


# --------------------------------------------------------------------------
# Kernel 1: fused MLP (BN folded) + row L2 normalize  ->  h  [N_pad, H_pad] bf16
# --------------------------------------------------------------------------
def mlp_kernel(x_ref, w1_ref, b1_ref, w2_ref, b2_ref, h_ref):
    # Linear1 with BatchNorm folded in (eval mode), then ReLU.
    h = jnp.dot(x_ref[...], w1_ref[...], preferred_element_type=jnp.float32)
    h = jnp.maximum(h + b1_ref[...], 0.0)
    # Dropout(0.5) is identity in eval mode.
    h = jnp.dot(h, w2_ref[...], preferred_element_type=jnp.float32) + b2_ref[...]
    # Row-wise L2 normalize: h / max(||h||, eps)  ==  h * rsqrt(max(ssq, eps^2))
    ssq = jnp.sum(h * h, axis=1, keepdims=True)
    inv = lax.rsqrt(jnp.maximum(ssq, NORM_EPS * NORM_EPS))
    h_ref[...] = (h * inv).astype(h_ref.dtype)   # bf16 store


# --------------------------------------------------------------------------
# Kernel 2 factory: sim tile = h_row @ h_col^T (+ optional adjacency blend)
# --------------------------------------------------------------------------
def _make_sim_kernel(tile, resident, with_adj):
    blend = 1.0 - ALPHA
    # Note: contracting the last dims of both bf16 operands lets Mosaic stream
    # the "transposed" operand directly into the MXU; no explicit h.T needed.
    dims = (((1,), (1,)), ((), ()))

    if resident:
        def kernel(h_ref, *refs):
            if with_adj:
                adj_ref, out_ref = refs
            else:
                (out_ref,) = refs
            i = pl.multiple_of(pl.program_id(0) * tile, tile)
            j = pl.multiple_of(pl.program_id(1) * tile, tile)
            hr = h_ref[pl.ds(i, tile), :]
            hc = h_ref[pl.ds(j, tile), :]
            sim = lax.dot_general(hr, hc, dims,
                                  preferred_element_type=jnp.float32)
            out = ALPHA * sim
            if with_adj:
                out = out + blend * adj_ref[...]
            out_ref[...] = out
        return kernel

    def kernel(hr_ref, hc_ref, *refs):
        if with_adj:
            adj_ref, out_ref = refs
        else:
            (out_ref,) = refs
        sim = lax.dot_general(hr_ref[...], hc_ref[...], dims,
                              preferred_element_type=jnp.float32)
        out = ALPHA * sim
        if with_adj:
            out = out + blend * adj_ref[...]
        out_ref[...] = out
    return kernel


# --------------------------------------------------------------------------
# Wrapper
# --------------------------------------------------------------------------
def enhanced_gsl_forward(x, original_adj, params, *, adj_is_zero=False):
    """x: [N, Cin] f32, original_adj: [N, N] f32 (ignored if adj_is_zero).
    Returns [N, N] f32."""
    n, cin = x.shape
    hidden = params["w1"].shape[0]

    tile = min(MAX_TILE, _round_up(n, LANE))     # adaptive output / row tile
    n_pad = _round_up(n, tile)
    cin_pad = _round_up(cin, LANE)
    h_pad = _round_up(hidden, LANE)

    # --- fold BatchNorm (eval) into Linear1, transpose PyTorch weights ---
    bn_scale = params["bn_gamma"] / jnp.sqrt(params["bn_var"] + BN_EPS)  # [H]
    bn_shift = params["bn_beta"] - params["bn_mean"] * bn_scale
    w1_fused = params["w1"].T * bn_scale[None, :]                        # [Cin, H]
    b1_fused = params["b1"] * bn_scale + bn_shift                        # [H]
    w2_t = params["w2"].T                                                # [H, H]
    b2 = params["b2"]                                                    # [H]

    # --- zero-pad everything to lane/tile-aligned shapes (exact) ---
    def pad2(a, r, c):
        return jnp.pad(a, ((0, r - a.shape[0]), (0, c - a.shape[1])))

    x_p = pad2(x.astype(jnp.float32), n_pad, cin_pad)
    w1_p = pad2(w1_fused.astype(jnp.float32), cin_pad, h_pad)
    b1_p = pad2(b1_fused.astype(jnp.float32).reshape(1, hidden), 1, h_pad)
    w2_p = pad2(w2_t.astype(jnp.float32), h_pad, h_pad)
    b2_p = pad2(b2.astype(jnp.float32).reshape(1, hidden), 1, h_pad)

    # --- kernel 1: h = normalize(MLP(x)), tiled over rows, bf16 output ---
    tm = tile   # row tile (up to 512 rows); weights stay VMEM-resident
    k1_vmem = _vmem_limit(
        2 * tm * cin_pad * 4                          # x tiles (double-buffered)
        + 2 * tm * h_pad * 2                          # bf16 h out tiles
        + 2 * (cin_pad + h_pad + 2) * h_pad * 4       # resident weights/biases
        + 4 * tm * h_pad * 4)                         # f32 intermediates

    h = pl.pallas_call(
        mlp_kernel,
        out_shape=jax.ShapeDtypeStruct((n_pad, h_pad), jnp.bfloat16),
        grid_spec=pltpu.PrefetchScalarGridSpec(
            num_scalar_prefetch=0,
            grid=(n_pad // tm,),
            in_specs=[
                pl.BlockSpec((tm, cin_pad), lambda i: (i, 0)),
                pl.BlockSpec((cin_pad, h_pad), lambda i: (0, 0)),   # resident
                pl.BlockSpec((1, h_pad), lambda i: (0, 0)),         # resident
                pl.BlockSpec((h_pad, h_pad), lambda i: (0, 0)),     # resident
                pl.BlockSpec((1, h_pad), lambda i: (0, 0)),         # resident
            ],
            out_specs=pl.BlockSpec((tm, h_pad), lambda i: (i, 0)),
        ),
        compiler_params=pltpu.CompilerParams(
            dimension_semantics=("parallel",),
            vmem_limit_bytes=k1_vmem),
    )(x_p, w1_p, b1_p, w2_p, b2_p)

    # --- kernel 2: out = alpha * (h @ h.T) [+ (1 - alpha) * adj], 2-D tiled ---
    resident = (n_pad * h_pad * 2) <= HC_RESIDENT_MAX_BYTES
    with_adj = not adj_is_zero
    kernel = _make_sim_kernel(tile, resident, with_adj)

    if resident:
        in_specs = [pl.BlockSpec((n_pad, h_pad), lambda i, j: (0, 0))]  # h resident
        operands = [h]
        h_bytes = 2 * n_pad * h_pad * 2
    else:
        in_specs = [pl.BlockSpec((tile, h_pad), lambda i, j: (i, 0)),   # h rows
                    pl.BlockSpec((tile, h_pad), lambda i, j: (j, 0))]   # h cols
        operands = [h, h]
        h_bytes = 4 * tile * h_pad * 2

    io_aliases = {}
    if with_adj:
        adj_p = pad2(original_adj.astype(jnp.float32), n_pad, n_pad)
        in_specs.append(pl.BlockSpec((tile, tile), lambda i, j: (i, j)))
        io_aliases = {len(operands): 0}     # reuse adj buffer as the output
        operands.append(adj_p)

    k2_vmem = _vmem_limit(
        h_bytes
        + 2 * tile * tile * 4                         # out tiles
        + (2 * tile * tile * 4 if with_adj else 0)    # adj tiles
        + 2 * tile * tile * 4)                        # f32 intermediates

    out_p = pl.pallas_call(
        kernel,
        out_shape=jax.ShapeDtypeStruct((n_pad, n_pad), jnp.float32),
        grid_spec=pltpu.PrefetchScalarGridSpec(
            num_scalar_prefetch=0,
            grid=(n_pad // tile, n_pad // tile),
            in_specs=in_specs,
            out_specs=pl.BlockSpec((tile, tile), lambda i, j: (i, j)),
        ),
        input_output_aliases=io_aliases,
        compiler_params=pltpu.CompilerParams(
            dimension_semantics=("parallel", "parallel"),
            vmem_limit_bytes=k2_vmem),
    )(*operands)

    return out_p[:n, :n]


def init_params(key, in_channel, hidden_channel):
    k1, k2, k3, k4 = jax.random.split(key, 4)
    lim1 = 1.0 / jnp.sqrt(in_channel)
    lim2 = 1.0 / jnp.sqrt(hidden_channel)
    return {
        "w1": jax.random.uniform(k1, (hidden_channel, in_channel),
                                 jnp.float32, -lim1, lim1),
        "b1": jax.random.uniform(k2, (hidden_channel,),
                                 jnp.float32, -lim1, lim1),
        "bn_gamma": jnp.ones((hidden_channel,), jnp.float32),
        "bn_beta": jnp.zeros((hidden_channel,), jnp.float32),
        "bn_mean": jnp.zeros((hidden_channel,), jnp.float32),
        "bn_var": jnp.ones((hidden_channel,), jnp.float32),
        "w2": jax.random.uniform(k3, (hidden_channel, hidden_channel),
                                 jnp.float32, -lim2, lim2),
        "b2": jax.random.uniform(k4, (hidden_channel,),
                                 jnp.float32, -lim2, lim2),
    }


if __name__ == "__main__":
    N, CIN, HIDDEN = 16, 16, 32   # small demo: 16 nodes, 16 feats, 32 hidden

    key = jax.random.PRNGKey(0)
    kx, kp = jax.random.split(key, 2)

    x = jax.random.normal(kx, (N, CIN), jnp.float32)
    # original_adj = torch.zeros((num_nodes, num_nodes)) in the reference.
    original_adj = jnp.zeros((N, N), jnp.float32)

    params = init_params(kp, CIN, HIDDEN)

    # Zero-adjacency fast path matches the reference construction above.
    sim = enhanced_gsl_forward(x, original_adj, params, adj_is_zero=True)
    jax.block_until_ready(sim)

    assert sim.shape == (N, N) and sim.dtype == jnp.float32
    assert bool(jnp.all(jnp.isfinite(sim)))
    print("KERNEL_OK")
</pallas_src>

<mosaic_0001>
module attributes {stable_mosaic.version = 11 : i64} {
  func.func @mlp_kernel(%arg0: i32, %arg1: memref<128x128xf32, #tpu.memory_space<vmem>>, %arg2: memref<128x128xf32, #tpu.memory_space<vmem>>, %arg3: memref<1x128xf32, #tpu.memory_space<vmem>>, %arg4: memref<128x128xf32, #tpu.memory_space<vmem>>, %arg5: memref<1x128xf32, #tpu.memory_space<vmem>>, %arg6: memref<128x128xbf16, #tpu.memory_space<vmem>>) attributes {dimension_semantics = [#tpu.dimension_semantics<parallel>], iteration_bounds = array<i64: 1>, scalar_prefetch = 0 : i64, scratch_operands = 0 : i64, tpu.core_type = #tpu.core_type<tc>, window_params = [{transform_indices = @transform_0, window_bounds = array<i64: 128, 128>}, {pipeline_mode = #tpu.pipeline_mode<synchronous>, transform_indices = @transform_1, window_bounds = array<i64: 128, 128>}, {pipeline_mode = #tpu.pipeline_mode<synchronous>, transform_indices = @transform_2, window_bounds = array<i64: 1, 128>}, {pipeline_mode = #tpu.pipeline_mode<synchronous>, transform_indices = @transform_3, window_bounds = array<i64: 128, 128>}, {pipeline_mode = #tpu.pipeline_mode<synchronous>, transform_indices = @transform_4, window_bounds = array<i64: 1, 128>}, {transform_indices = @transform_5, window_bounds = array<i64: 128, 128>}]} {
    %c0 = arith.constant 0 : index
    %c0_0 = arith.constant 0 : index
    %0 = vector.load %arg1[%c0, %c0_0] : memref<128x128xf32, #tpu.memory_space<vmem>>, vector<128x128xf32>
    %c0_1 = arith.constant 0 : index
    %c0_2 = arith.constant 0 : index
    %1 = vector.load %arg2[%c0_1, %c0_2] : memref<128x128xf32, #tpu.memory_space<vmem>>, vector<128x128xf32>
    %cst = arith.constant dense<0.000000e+00> : vector<128x128xf32>
    %2 = tpu.matmul %0, %1, %cst {dimension_numbers = #tpu.dot_dimension_numbers<[1], [0], [0], [1], [0, 0, 1, 1], [], []>} : vector<128x128xf32>, vector<128x128xf32>, vector<128x128xf32> -> vector<128x128xf32>
    %c0_3 = arith.constant 0 : index
    %c0_4 = arith.constant 0 : index
    %3 = vector.load %arg3[%c0_3, %c0_4] : memref<1x128xf32, #tpu.memory_space<vmem>>, vector<1x128xf32>
    %4 = vector.broadcast %3 : vector<1x128xf32> to vector<128x128xf32>
    %5 = arith.addf %2, %4 : vector<128x128xf32>
    %cst_5 = arith.constant 0.000000e+00 : f32
    %6 = vector.broadcast %cst_5 : f32 to vector<128x128xf32>
    %7 = arith.maximumf %5, %6 : vector<128x128xf32>
    %c0_6 = arith.constant 0 : index
    %c0_7 = arith.constant 0 : index
    %8 = vector.load %arg4[%c0_6, %c0_7] : memref<128x128xf32, #tpu.memory_space<vmem>>, vector<128x128xf32>
    %cst_8 = arith.constant dense<0.000000e+00> : vector<128x128xf32>
    %9 = tpu.matmul %7, %8, %cst_8 {dimension_numbers = #tpu.dot_dimension_numbers<[1], [0], [0], [1], [0, 0, 1, 1], [], []>} : vector<128x128xf32>, vector<128x128xf32>, vector<128x128xf32> -> vector<128x128xf32>
    %c0_9 = arith.constant 0 : index
    %c0_10 = arith.constant 0 : index
    %10 = vector.load %arg5[%c0_9, %c0_10] : memref<1x128xf32, #tpu.memory_space<vmem>>, vector<1x128xf32>
    %11 = vector.broadcast %10 : vector<1x128xf32> to vector<128x128xf32>
    %12 = arith.addf %9, %11 : vector<128x128xf32>
    %13 = arith.mulf %12, %12 : vector<128x128xf32>
    %cst_11 = arith.constant dense<0.000000e+00> : vector<128xf32>
    %14 = vector.multi_reduction <add>, %13, %cst_11 [1] : vector<128x128xf32> to vector<128xf32>
    %15 = vector.shape_cast %14 : vector<128xf32> to vector<128x1xf32>
    %cst_12 = arith.constant 1.000000e-24 : f32
    %16 = vector.broadcast %cst_12 : f32 to vector<128x1xf32>
    %17 = arith.maximumf %15, %16 : vector<128x1xf32>
    %18 = math.rsqrt %17 : vector<128x1xf32>
    %19 = vector.broadcast %18 : vector<128x1xf32> to vector<128x128xf32>
    %20 = arith.mulf %12, %19 : vector<128x128xf32>
    %21 = arith.truncf %20 : vector<128x128xf32> to vector<128x128xbf16>
    %c0_13 = arith.constant 0 : index
    %c0_14 = arith.constant 0 : index
    %22 = vector.load %arg6[%c0_13, %c0_14] : memref<128x128xbf16, #tpu.memory_space<vmem>>, vector<128x128xbf16>
    tpu.vector_store %arg6[%c0_13, %c0_14], %21 {strides = array<i32>} : memref<128x128xbf16, #tpu.memory_space<vmem>>, vector<128x128xbf16>,
    return
  }
  func.func @transform_0(%arg0: i32) -> (i32, i32) {
    %c0_i32 = arith.constant 0 : i32
    %c0_i32_0 = arith.constant 0 : i32
    return %arg0, %c0_i32 : i32, i32
  }
  func.func @transform_1(%arg0: i32) -> (i32, i32) {
    %c0_i32 = arith.constant 0 : i32
    %c0_i32_0 = arith.constant 0 : i32
    %c0_i32_1 = arith.constant 0 : i32
    return %c0_i32, %c0_i32_0 : i32, i32
  }
  func.func @transform_2(%arg0: i32) -> (i32, i32) {
    %c0_i32 = arith.constant 0 : i32
    %c0_i32_0 = arith.constant 0 : i32
    %c0_i32_1 = arith.constant 0 : i32
    return %c0_i32, %c0_i32_0 : i32, i32
  }
  func.func @transform_3(%arg0: i32) -> (i32, i32) {
    %c0_i32 = arith.constant 0 : i32
    %c0_i32_0 = arith.constant 0 : i32
    %c0_i32_1 = arith.constant 0 : i32
    return %c0_i32, %c0_i32_0 : i32, i32
  }
  func.func @transform_4(%arg0: i32) -> (i32, i32) {
    %c0_i32 = arith.constant 0 : i32
    %c0_i32_0 = arith.constant 0 : i32
    %c0_i32_1 = arith.constant 0 : i32
    return %c0_i32, %c0_i32_0 : i32, i32
  }
  func.func @transform_5(%arg0: i32) -> (i32, i32) {
    %c0_i32 = arith.constant 0 : i32
    %c0_i32_0 = arith.constant 0 : i32
    return %arg0, %c0_i32 : i32, i32
  }
}

</mosaic_0001>

<bundles_post_ra>
// kernel: tpu_custom_call.1
= control target key start
LH: loop header
LB: loop body
LE: loop exit
PB: predicated region body
PF: predicated region fallthrough
CT: control target
= control target key end

     0   :  { %10 = vsyncpa [#allocation3], 0  ;;  %s1010_s0 = inlined_call_operand.hbm [shape: f32[128,128], index: 0, kind: input, shape index: {}]   ;;  %s1011_s1 = inlined_call_operand.hbm [shape: f32[128,128], index: 1, kind: input, shape index: {}]   ;;  %s1012_s2 = inlined_call_operand.vmem [shape: f32[1,128], index: 2, kind: input, shape index: {}]   ;;  %s1013_s3 = inlined_call_operand.hbm [shape: f32[128,128], index: 3, kind: input, shape index: {}]   ;;  %s1014_s4 = inlined_call_operand.vmem [shape: f32[1,128], index: 4, kind: input, shape index: {}]   ;;  %s1015_s5 = inlined_call_operand.hbm [shape: bf16[128,128], index: 5, kind: output, shape index: {}]  }
   0x1   :  { %11 = vsyncpa [#allocation6], 0 }
   0x2   :  { %12 = vsyncpa [#allocation4], 0  ;;  %s30_s20 = sshll.u32 %s1011_s1, 4  ;;  %s785_s21 = smov [#allocation5]   ;;  %s31_s20 = int_to_ptr.hbm [resolvable:$true] %s30_s20 }
   0x3   :  { %s32_s22 = sshll.u32 %s785_s21, 4  ;;  %s17_s25 = sshll.u32 %s1010_s0, 4  ;;  %s33_s22 = int_to_ptr.vmem [resolvable:$true] %s32_s22  ;;  %s18_s25 = int_to_ptr.hbm [resolvable:$true] %s17_s25 }
   0x4   :  { %s786_s26 = smov 128   ;;  %s787_s27 = smov 8  }
   0x5   :  { %38 = dma.hbm_to_vmem [thread:$0]  %s31_s20, 2048, %s33_s22, [#allocation6], %s786_s26, %s786_s26, %s787_s27  }
   0x6   :  { %s788_s28 = smov [#allocation2]   ;;  %s45_s7 = sshll.u32 %s1013_s3, 4  ;;  %s46_s7 = int_to_ptr.hbm [resolvable:$true] %s45_s7 }
   0x7   :  { %s19_s29 = sshll.u32 %s788_s28, 4  ;;  %s789_s1 = smov [#allocation7]   ;;  %s20_s29 = int_to_ptr.vmem [resolvable:$true] %s19_s29 }
   0x8   :  { %25 = dma.hbm_to_vmem [thread:$0]  %s18_s25, 2048, %s20_s29, [#allocation3], %s786_s26, %s786_s26, %s787_s27  }
   0x9   :  { %s47_s8 = sshll.u32 %s789_s1, 4  ;;  %s48_s8 = int_to_ptr.vmem [resolvable:$true] %s47_s8 }
   0xa   :  { %53 = dma.hbm_to_vmem [thread:$0]  %s46_s7, 2048, %s48_s8, [#allocation6], %s786_s26, %s786_s26, %s787_s27  }
   0xb   :  { %779 = dma.done.wait [#allocation3], 2048  }
   0xc   :  { %780 = vsyncadd [#allocation3], 4294965248 }
   0xd   :  { %781 = dma.done.wait [#allocation6], 4096  }
   0xe   :  { %782 = vsyncadd [#allocation6], 4294963200  ;;  %v99_v0 = vld [vmem:[#allocation5 + $0x78] sm:$0xff]  ;;  %v98_v1 = vld [vmem:[#allocation5 + $0x70] sm:$0xff]  ;;  %s548_s13 = sshll.u32 %s1015_s5, 4  ;;  %s791_s14 = smov 64   ;;  %s549_s13 = int_to_ptr.hbm [resolvable:$true] %s548_s13 }
   0xf   :  { %104 = vmatpush.msra.mxu0 %v99_v0  ;;  %609 = vmatpush.msra.mxu2 %v99_v0  ;;  %v97_v2 = vld [vmem:[#allocation5 + $0x68] sm:$0xff]  ;;  %v96_v3 = vld [vmem:[#allocation5 + $0x60] sm:$0xff]  ;;  %v95_v4 = vld [vmem:[#allocation5 + $0x58] sm:$0xff]  ;;  %s792_s15 = smov 4  }
  0x10   :  { %v94_v5 = vld [vmem:[#allocation5 + $0x50] sm:$0xff]  ;;  %v93_v6 = vld [vmem:[#allocation5 + $0x48] sm:$0xff]  ;;  %v92_v7 = vld [vmem:[#allocation5 + $0x40] sm:$0xff] }
  0x11   :  { %105 = vmatpush.msra.mxu0 %v98_v1  ;;  %610 = vmatpush.msra.mxu2 %v98_v1  ;;  %v91_v8 = vld [vmem:[#allocation5 + $0x38] sm:$0xff]  ;;  %v90_v9 = vld [vmem:[#allocation5 + $0x30] sm:$0xff]  ;;  %v89_v10 = vld [vmem:[#allocation5 + $0x28] sm:$0xff] }
  0x12   :  { %v88_v11 = vld [vmem:[#allocation5 + $0x20] sm:$0xff]  ;;  %v87_v12 = vld [vmem:[#allocation5 + $0x18] sm:$0xff]  ;;  %v86_v13 = vld [vmem:[#allocation5 + $0x10] sm:$0xff] }
  0x13   :  { %106 = vmatpush.msra.mxu0 %v97_v2  ;;  %611 = vmatpush.msra.mxu2 %v97_v2  ;;  %v85_v14 = vld [vmem:[#allocation5 + $0x8] sm:$0xff]  ;;  %v84_v15 = vld [vmem:[#allocation5] sm:$0xff]  ;;  %v70_v20 = vld [vmem:[#allocation2 + $0x10] sm:$0xff] }
  0x14   :  { %v68_v16 = vld [vmem:[#allocation2] sm:$0xff]  ;;  %v69_v18 = vld [vmem:[#allocation2 + $0x8] sm:$0xff]  ;;  %v78_v21 = vld [vmem:[#allocation2 + $0x50] sm:$0xff] }
  0x15   :  { %107 = vmatpush.msra.mxu0 %v96_v3  ;;  %612 = vmatpush.msra.mxu2 %v96_v3  ;;  %v76_v17 = vld [vmem:[#allocation2 + $0x40] sm:$0xff]  ;;  %v77_v19 = vld [vmem:[#allocation2 + $0x48] sm:$0xff]  ;;  %v71_v22 = vld [vmem:[#allocation2 + $0x18] sm:$0xff] }
  0x16   :  { %v79_v23 = vld [vmem:[#allocation2 + $0x58] sm:$0xff]  ;;  %v199_v25 = vld [vmem:[#allocation7 + $0x70] sm:$0xff]  ;;  %v198_v26 = vld [vmem:[#allocation7 + $0x68] sm:$0xff] }
  0x17   :  { %108 = vmatpush.msra.mxu0 %v95_v4  ;;  %613 = vmatpush.msra.mxu2 %v95_v4  ;;  %v200_v24 = vld [vmem:[#allocation7 + $0x78] sm:$0xff]  ;;  %v197_v27 = vld [vmem:[#allocation7 + $0x60] sm:$0xff]  ;;  %v195_v31 = vld [vmem:[#allocation7 + $0x50] sm:$0xff] }
  0x18   :  { %205 = vmatpush.msra.mxu1 %v200_v24  ;;  %625 = vmatpush.msra.mxu3 %v200_v24  ;;  %v72_v28 = vld [vmem:[#allocation2 + $0x20] sm:$0xff]  ;;  %v196_v30 = vld [vmem:[#allocation7 + $0x58] sm:$0xff]  ;;  %v194_v32 = vld [vmem:[#allocation7 + $0x48] sm:$0xff] }
  0x19   :  { %109 = vmatpush.msra.mxu0 %v94_v5  ;;  %614 = vmatpush.msra.mxu2 %v94_v5  ;;  %v80_v29 = vld [vmem:[#allocation2 + $0x60] sm:$0xff]  ;;  %v73_v34 = vld [vmem:[#allocation2 + $0x28] sm:$0xff]  ;;  %v192_v36 = vld [vmem:[#allocation7 + $0x38] sm:$0xff] }
  0x1a   :  { %206 = vmatpush.msra.mxu1 %v199_v25  ;;  %626 = vmatpush.msra.mxu3 %v199_v25  ;;  %v193_v33 = vld [vmem:[#allocation7 + $0x40] sm:$0xff]  ;;  %v81_v35 = vld [vmem:[#allocation2 + $0x68] sm:$0xff]  ;;  %v191_v37 = vld [vmem:[#allocation7 + $0x30] sm:$0xff] }
  0x1b   :  { %110 = vmatpush.msra.mxu0 %v93_v6  ;;  %615 = vmatpush.msra.mxu2 %v93_v6  ;;  %v190_v38 = vld [vmem:[#allocation7 + $0x28] sm:$0xff]  ;;  %v189_v39 = vld [vmem:[#allocation7 + $0x20] sm:$0xff]  ;;  %v74_v40 = vld [vmem:[#allocation2 + $0x30] sm:$0xff] }
  0x1c   :  { %207 = vmatpush.msra.mxu1 %v198_v26  ;;  %627 = vmatpush.msra.mxu3 %v198_v26  ;;  %v82_v41 = vld [vmem:[#allocation2 + $0x70] sm:$0xff]  ;;  %v188_v42 = vld [vmem:[#allocation7 + $0x18] sm:$0xff]  ;;  %v186_v46 = vld [vmem:[#allocation7 + $0x8] sm:$0xff] }
  0x1d   :  { %111 = vmatpush.msra.mxu0 %v92_v7  ;;  %616 = vmatpush.msra.mxu2 %v92_v7  ;;  %v75_v43 = vld [vmem:[#allocation2 + $0x38] sm:$0xff]  ;;  %v187_v45 = vld [vmem:[#allocation7 + $0x10] sm:$0xff]  ;;  %v185_v47 = vld [vmem:[#allocation7] sm:$0xff] }
  0x1e   :  { %208 = vmatpush.msra.mxu1 %v197_v27  ;;  %628 = vmatpush.msra.mxu3 %v197_v27  ;;  %v83_v44 = vld [vmem:[#allocation2 + $0x78] sm:$0xff]  ;;  %v649_v48 = vld [vmem:[%s1012_s2] ss:$0 sm:$0xff] }
  0x1f   :  { %112 = vmatpush.msra.mxu0 %v91_v8  ;;  %617 = vmatpush.msra.mxu2 %v91_v8 }
  0x20   :  { %209 = vmatpush.msra.mxu1 %v196_v30  ;;  %629 = vmatpush.msra.mxu3 %v196_v30 }
  0x21   :  { %113 = vmatpush.msra.mxu0 %v90_v9  ;;  %618 = vmatpush.msra.mxu2 %v90_v9 }
  0x22   :  { %210 = vmatpush.msra.mxu1 %v195_v31  ;;  %630 = vmatpush.msra.mxu3 %v195_v31 }
  0x23   :  { %114 = vmatpush.msra.mxu0 %v89_v10  ;;  %619 = vmatpush.msra.mxu2 %v89_v10 }
  0x24   :  { %211 = vmatpush.msra.mxu1 %v194_v32  ;;  %631 = vmatpush.msra.mxu3 %v194_v32 }
  0x25   :  { %115 = vmatpush.msra.mxu0 %v88_v11  ;;  %620 = vmatpush.msra.mxu2 %v88_v11 }
  0x26   :  { %212 = vmatpush.msra.mxu1 %v193_v33  ;;  %632 = vmatpush.msra.mxu3 %v193_v33  ;;  %v650_v33 = vld [vmem:[%s1014_s4] ss:$0 sm:$0xff]  ;;  %s790_s4 = smov [#allocation8]  }
  0x27   :  { %116 = vmatpush.msra.mxu0 %v87_v12  ;;  %621 = vmatpush.msra.mxu2 %v87_v12  ;;  %s546_s10 = sshll.u32 %s790_s4, 4  ;;  %s547_s10 = int_to_ptr.vmem [resolvable:$true] %s546_s10 }
  0x28   :  { %213 = vmatpush.msra.mxu1 %v192_v36  ;;  %633 = vmatpush.msra.mxu3 %v192_v36 }
  0x29   :  { %117 = vmatpush.msra.mxu0 %v86_v13  ;;  %622 = vmatpush.msra.mxu2 %v86_v13 }
  0x2a   :  { %214 = vmatpush.msra.mxu1 %v191_v37  ;;  %634 = vmatpush.msra.mxu3 %v191_v37 }
  0x2b   :  { %118 = vmatpush.msra.mxu0 %v85_v14  ;;  %623 = vmatpush.msra.mxu2 %v85_v14 }
  0x2c   :  { %215 = vmatpush.msra.mxu1 %v190_v38  ;;  %635 = vmatpush.msra.mxu3 %v190_v38 }
  0x2d   :  { %119 = vmatpush.msra.mxu0 %v84_v15  ;;  %624 = vmatpush.msra.mxu2 %v84_v15 }
  0x2e   :  { %120 = vmatmul.f32.vlgmr.msra.gmra.mxu0 %v68_v16  ;;  %144 = vmatmul.f32.vlgmr.msra.gmra.mxu2 %v76_v17 }
  0x2f   :  { %216 = vmatpush.msra.mxu1 %v189_v39  ;;  %636 = vmatpush.msra.mxu3 %v189_v39 }
  0x31   :  { %217 = vmatpush.msra.mxu1 %v188_v42  ;;  %637 = vmatpush.msra.mxu3 %v188_v42 }
  0x33   :  { %218 = vmatpush.msra.mxu1 %v187_v45  ;;  %638 = vmatpush.msra.mxu3 %v187_v45 }
  0x35   :  { %219 = vmatpush.msra.mxu1 %v186_v46  ;;  %639 = vmatpush.msra.mxu3 %v186_v46 }
  0x36   :  { %123 = vmatmul.f32.gmra.mxu0 %v69_v18  ;;  %147 = vmatmul.f32.gmra.mxu2 %v77_v19 }
  0x37   :  { %220 = vmatpush.msra.mxu1 %v185_v47  ;;  %640 = vmatpush.msra.mxu3 %v185_v47 }
  0x3e   :  { %126 = vmatmul.f32.gmra.mxu0 %v70_v20  ;;  %150 = vmatmul.f32.gmra.mxu2 %v78_v21 }
  0x46   :  { %129 = vmatmul.f32.gmra.mxu0 %v71_v22  ;;  %153 = vmatmul.f32.gmra.mxu2 %v79_v23 }
  0x4e   :  { %132 = vmatmul.f32.gmra.mxu0 %v72_v28  ;;  %156 = vmatmul.f32.gmra.mxu2 %v80_v29 }
  0x56   :  { %135 = vmatmul.f32.gmra.mxu0 %v73_v34  ;;  %159 = vmatmul.f32.gmra.mxu2 %v81_v35 }
  0x5e   :  { %138 = vmatmul.f32.gmra.mxu0 %v74_v40  ;;  %162 = vmatmul.f32.gmra.mxu2 %v82_v41 }
  0x66   :  { %141 = vmatmul.f32.gmra.mxu0 %v75_v43  ;;  %165 = vmatmul.f32.gmra.mxu2 %v83_v44 }
  0xab   :  { %v121_v49 = vpop.f32.mrf.mxu0 }
  0xac   :  { %v122_v50 = vadd.f32 %v649_v48, %v121_v49 }
  0xae   :  { %v169_v51 = vmax.f32 %v122_v50, 0.0 }
  0xb0   :  { %221 = vmatmul.f32.vlgmr.msra.gmra.mxu1 %v169_v51 }
  0xb1   :  { %v145_v52 = vpop.f32.mrf.mxu2 }
  0xb2   :  { %v146_v53 = vadd.f32 %v649_v48, %v145_v52 }
  0xb3   :  { %v124_v54 = vpop.f32.mrf.mxu0 }
  0xb4   :  { %v177_v55 = vmax.f32 %v146_v53, 0.0  ;;  %v125_v56 = vadd.f32 %v649_v48, %v124_v54 }
  0xb6   :  { %v170_v57 = vmax.f32 %v125_v56, 0.0  ;;  %245 = vmatmul.f32.vlgmr.msra.gmra.mxu3 %v177_v55 }
  0xb8   :  { %224 = vmatmul.f32.gmra.mxu1 %v170_v57 }
  0xb9   :  { %v148_v58 = vpop.f32.mrf.mxu2 }
  0xba   :  { %v149_v59 = vadd.f32 %v649_v48, %v148_v58 }
  0xbb   :  { %v127_v60 = vpop.f32.mrf.mxu0 }
  0xbc   :  { %v178_v61 = vmax.f32 %v149_v59, 0.0  ;;  %v128_v62 = vadd.f32 %v649_v48, %v127_v60 }
  0xbe   :  { %v171_v63 = vmax.f32 %v128_v62, 0.0  ;;  %248 = vmatmul.f32.gmra.mxu3 %v178_v61 }
  0xc0   :  { %227 = vmatmul.f32.gmra.mxu1 %v171_v63 }
  0xc1   :  { %v151_v0 = vpop.f32.mrf.mxu2 }
  0xc2   :  { %v152_v1 = vadd.f32 %v649_v48, %v151_v0 }
  0xc3   :  { %v130_v2 = vpop.f32.mrf.mxu0 }
  0xc4   :  { %v179_v3 = vmax.f32 %v152_v1, 0.0  ;;  %v131_v4 = vadd.f32 %v649_v48, %v130_v2 }
  0xc6   :  { %v172_v5 = vmax.f32 %v131_v4, 0.0  ;;  %251 = vmatmul.f32.gmra.mxu3 %v179_v3 }
  0xc8   :  { %230 = vmatmul.f32.gmra.mxu1 %v172_v5 }
  0xc9   :  { %v154_v6 = vpop.f32.mrf.mxu2 }
  0xca   :  { %v155_v7 = vadd.f32 %v649_v48, %v154_v6 }
  0xcb   :  { %v133_v8 = vpop.f32.mrf.mxu0 }
  0xcc   :  { %v180_v9 = vmax.f32 %v155_v7, 0.0  ;;  %v134_v10 = vadd.f32 %v649_v48, %v133_v8 }
  0xce   :  { %v173_v11 = vmax.f32 %v134_v10, 0.0  ;;  %254 = vmatmul.f32.gmra.mxu3 %v180_v9 }
  0xd0   :  { %233 = vmatmul.f32.gmra.mxu1 %v173_v11 }
  0xd1   :  { %v157_v12 = vpop.f32.mrf.mxu2 }
  0xd2   :  { %v158_v13 = vadd.f32 %v649_v48, %v157_v12 }
  0xd3   :  { %v136_v14 = vpop.f32.mrf.mxu0 }
  0xd4   :  { %v181_v15 = vmax.f32 %v158_v13, 0.0  ;;  %v137_v16 = vadd.f32 %v649_v48, %v136_v14 }
  0xd6   :  { %v174_v17 = vmax.f32 %v137_v16, 0.0  ;;  %257 = vmatmul.f32.gmra.mxu3 %v181_v15 }
  0xd8   :  { %236 = vmatmul.f32.gmra.mxu1 %v174_v17 }
  0xd9   :  { %v160_v18 = vpop.f32.mrf.mxu2 }
  0xda   :  { %v161_v19 = vadd.f32 %v649_v48, %v160_v18 }
  0xdb   :  { %v139_v20 = vpop.f32.mrf.mxu0 }
  0xdc   :  { %v182_v21 = vmax.f32 %v161_v19, 0.0  ;;  %v140_v22 = vadd.f32 %v649_v48, %v139_v20 }
  0xde   :  { %v175_v23 = vmax.f32 %v140_v22, 0.0  ;;  %260 = vmatmul.f32.gmra.mxu3 %v182_v21 }
  0xe0   :  { %239 = vmatmul.f32.gmra.mxu1 %v175_v23 }
  0xe1   :  { %v163_v24 = vpop.f32.mrf.mxu2 }
  0xe2   :  { %v164_v25 = vadd.f32 %v649_v48, %v163_v24 }
  0xe3   :  { %v142_v26 = vpop.f32.mrf.mxu0 }
  0xe4   :  { %v183_v27 = vmax.f32 %v164_v25, 0.0  ;;  %v143_v28 = vadd.f32 %v649_v48, %v142_v26 }
  0xe6   :  { %v176_v29 = vmax.f32 %v143_v28, 0.0  ;;  %263 = vmatmul.f32.gmra.mxu3 %v183_v27 }
  0xe8   :  { %242 = vmatmul.f32.gmra.mxu1 %v176_v29 }
  0xe9   :  { %v166_v30 = vpop.f32.mrf.mxu2 }
  0xea   :  { %v167_v31 = vadd.f32 %v649_v48, %v166_v30 }
  0xec   :  { %v184_v32 = vmax.f32 %v167_v31, 0.0 }
  0xee   :  { %266 = vmatmul.f32.gmra.mxu3 %v184_v32 }
 0x12d   :  { %v222_v34 = vpop.f32.mrf.mxu1 }
 0x12e   :  { %v838_v35 = vadd.f32 %v650_v33, %v222_v34 }
 0x130   :  { %v270_v36 = vmul.f32 %v838_v35, %v838_v35 }
 0x132   :  { %286 = vadd.xlane.f32.xlu0 %v270_v36 }
 0x135   :  { %v225_v37 = vpop.f32.mrf.mxu1 }
 0x136   :  { %v842_v38 = vadd.f32 %v650_v33, %v225_v37 }
 0x138   :  { %v271_v39 = vmul.f32 %v842_v38, %v842_v38 }
 0x139   :  { %v246_v40 = vpop.f32.mrf.mxu3 }
 0x13a   :  { %v846_v41 = vadd.f32 %v650_v33, %v246_v40  ;;  %288 = vadd.xlane.f32.xlu0 %v271_v39 }
 0x13c   :  { %v278_v42 = vmul.f32 %v846_v41, %v846_v41 }
 0x13d   :  { %v228_v43 = vpop.f32.mrf.mxu1 }
 0x13e   :  { %v850_v44 = vadd.f32 %v650_v33, %v228_v43  ;;  %302 = vadd.xlane.f32.xlu2 %v278_v42 }
 0x140   :  { %v272_v45 = vmul.f32 %v850_v44, %v850_v44 }
 0x141   :  { %v249_v46 = vpop.f32.mrf.mxu3 }
 0x142   :  { %v854_v47 = vadd.f32 %v650_v33, %v249_v46  ;;  %290 = vadd.xlane.f32.xlu1 %v272_v45 }
 0x144   :  { %v279_v48 = vmul.f32 %v854_v47, %v854_v47 }
 0x145   :  { %v231_v49 = vpop.f32.mrf.mxu1 }
 0x146   :  { %v858_v50 = vadd.f32 %v650_v33, %v231_v49  ;;  %304 = vadd.xlane.f32.xlu0 %v279_v48 }
 0x148   :  { %v273_v51 = vmul.f32 %v858_v50, %v858_v50 }
 0x149   :  { %v252_v52 = vpop.f32.mrf.mxu3 }
 0x14a   :  { %292 = vadd.xlane.f32.xlu1 %v273_v51  ;;  %v862_v53 = vadd.f32 %v650_v33, %v252_v52 }
 0x14c   :  { %v280_v57 = vmul.f32 %v862_v53, %v862_v53 }
 0x14d   :  { %v234_v54 = vpop.f32.mrf.mxu1 }
 0x14e   :  { %v864_v55 = vadd.f32 %v650_v33, %v234_v54 }
 0x150   :  { %v274_v56 = vmul.f32 %v864_v55, %v864_v55 }
 0x151   :  { %v255_v58 = vpop.f32.mrf.mxu3 }
 0x152   :  { %294 = vadd.xlane.f32.xlu2 %v274_v56  ;;  %306 = vadd.xlane.f32.xlu1 %v280_v57  ;;  %v870_v59 = vadd.f32 %v650_v33, %v255_v58 }
 0x154   :  { %v281_v61 = vmul.f32 %v870_v59, %v870_v59 }
 0x155   :  { %v237_v60 = vpop.f32.mrf.mxu1 }
 0x156   :  { %v876_v0 = vadd.f32 %v650_v33, %v237_v60 }
 0x158   :  { %v275_v4 = vmul.f32 %v876_v0, %v876_v0 }
 0x159   :  { %v258_v62 = vpop.f32.mrf.mxu3 }
 0x15a   :  { %v874_v63 = vadd.f32 %v650_v33, %v258_v62  ;;  %308 = vadd.xlane.f32.xlu2 %v281_v61 }
 0x15c   :  { %v282_v1 = vmul.f32 %v874_v63, %v874_v63 }
 0x15d   :  { %v240_v2 = vpop.f32.mrf.mxu1 }
 0x15e   :  { %v880_v3 = vadd.f32 %v650_v33, %v240_v2  ;;  %310 = vadd.xlane.f32.xlu0 %v282_v1 }
 0x160   :  { %v276_v6 = vmul.f32 %v880_v3, %v880_v3 }
 0x161   :  { %v261_v5 = vpop.f32.mrf.mxu3 }
 0x162   :  { %296 = vadd.xlane.f32.xlu2 %v275_v4  ;;  %v892_v12 = vadd.f32 %v650_v33, %v261_v5 }
 0x164   :  { %v283_v14 = vmul.f32 %v892_v12, %v892_v12 }
 0x165   :  { %v243_v7 = vpop.f32.mrf.mxu1 }
 0x166   :  { %v886_v8 = vadd.f32 %v650_v33, %v243_v7  ;;  %298 = vadd.xlane.f32.xlu0 %v276_v6 }
 0x168   :  { %v277_v9 = vmul.f32 %v886_v8, %v886_v8 }
 0x169   :  { %v264_v10 = vpop.f32.mrf.mxu3 }
 0x16a   :  { %v890_v11 = vadd.f32 %v650_v33, %v264_v10  ;;  %300 = vadd.xlane.f32.xlu1 %v277_v9 }
 0x16c   :  { %v284_v13 = vmul.f32 %v890_v11, %v890_v11 }
 0x16e   :  { %314 = vadd.xlane.f32.xlu2 %v284_v13 }
 0x171   :  { %v267_v15 = vpop.f32.mrf.mxu3 }
 0x172   :  { %v898_v16 = vadd.f32 %v650_v33, %v267_v15  ;;  %312 = vadd.xlane.f32.xlu1 %v283_v14 }
 0x174   :  { %v285_v17 = vmul.f32 %v898_v16, %v898_v16 }
 0x176   :  { %316 = vadd.xlane.f32.xlu0 %v285_v17 }
 0x1a5   :  { %v287_v18 = vpop.xlane.xlu0 %286 }
 0x1a6   :  { %v318_v19 = vmax.f32 %v287_v18, 1e-24 }
 0x1a8   :  { %651 = vrsqrt.f32 %v318_v19  ;;  %vm340_vm1 = vweird.f32 %v318_v19 }
 0x1ad   :  { %v289_v20 = vpop.xlane.xlu0 %288 }
 0x1ae   :  { %v652_v21 = vpop.eup %651  ;;  %v319_v22 = vmax.f32 %v289_v20, 1e-24 }
 0x1af   :  { %v335_v23 = vmul.f32 %v652_v21, %v318_v19  ;;  %vm341_vm0 = vweird.f32 %v652_v21 }
 0x1b0   :  { %653 = vrsqrt.f32 %v319_v22  ;;  %vm342_vm3 = vmor %vm340_vm1, %vm341_vm0  ;;  %vm350_vm4 = vweird.f32 %v319_v22 }
 0x1b1   :  { %v336_v24 = vmul.f32 %v652_v21, %v335_v23  ;;  %v303_v25 = vpop.xlane.xlu2 %302 }
 0x1b2   :  { %v326_v26 = vmax.f32 %v303_v25, 1e-24 }
 0x1b3   :  { %v337_v27 = vmul.f32 0.5, %v336_v24 }
 0x1b4   :  { %655 = vrsqrt.f32 %v326_v26  ;;  %vm420_vm7 = vweird.f32 %v326_v26 }
 0x1b5   :  { %v291_v28 = vpop.xlane.xlu1 %290  ;;  %v338_v31 = vsub.f32 1.5, %v337_v27 }
 0x1b6   :  { %v654_v29 = vpop.eup %653  ;;  %v902_v30 = vmax.f32 %v291_v28, 1e-24 }
 0x1b7   :  { %v345_v32 = vmul.f32 %v654_v29, %v319_v22  ;;  %v339_v39 = vmul.f32 %v652_v21, %v338_v31  ;;  %vm351_vm2 = vweird.f32 %v654_v29 }
 0x1b8   :  { %657 = vrsqrt.f32 %v902_v30  ;;  %vm352_vm5 = vmor %vm350_vm4, %vm351_vm2  ;;  %vm360_vm13 = vweird.f32 %v902_v30 }
 0x1b9   :  { %v346_v33 = vmul.f32 %v654_v29, %v345_v32  ;;  %v305_v34 = vpop.xlane.xlu0 %304  ;;  %v343_v51 = vsel %vm342_vm3, %v652_v21, %v339_v39 }
 0x1ba   :  { %v905_v36 = vpop.eup %655  ;;  %v327_v37 = vmax.f32 %v305_v34, 1e-24  ;;  %v494_v61 = vmul.f32 %v343_v51, %v838_v35 }
 0x1bb   :  { %v347_v40 = vmul.f32 0.5, %v346_v33  ;;  %v415_v42 = vmul.f32 %v905_v36, %v326_v26  ;;  %vm421_vm6 = vweird.f32 %v905_v36 }
 0x1bc   :  { %659 = vrsqrt.f32 %v327_v37  ;;  %vm422_vm9 = vmor %vm420_vm7, %vm421_vm6  ;;  %vm430_vm11 = vweird.f32 %v327_v37 }
 0x1bd   :  { %v348_v43 = vsub.f32 1.5, %v347_v40  ;;  %v416_v45 = vmul.f32 %v905_v36, %v415_v42  ;;  %v293_v46 = vpop.xlane.xlu1 %292 }
 0x1be   :  { %v909_v48 = vpop.eup %657  ;;  %v321_v49 = vmax.f32 %v293_v46, 1e-24 }
 0x1bf   :  { %v349_v52 = vmul.f32 %v654_v29, %v348_v43  ;;  %v417_v54 = vmul.f32 0.5, %v416_v45  ;;  %v355_v56 = vmul.f32 %v909_v48, %v902_v30  ;;  %vm361_vm10 = vweird.f32 %v909_v48 }
 0x1c0   :  { %661 = vrsqrt.f32 %v321_v49  ;;  %vm362_vm15 = vmor %vm360_vm13, %vm361_vm10  ;;  %vm370_vm0 = vweird.f32 %v321_v49 }
 0x1c1   :  { %v353_v57 = vsel %vm352_vm5, %v654_v29, %v349_v52  ;;  %v356_v58 = vmul.f32 %v909_v48, %v355_v56  ;;  %v418_v1 = vsub.f32 1.5, %v417_v54 }
 0x1c2   :  { %v660_v60 = vpop.eup %659  ;;  %v495_v62 = vmul.f32 %v353_v57, %v842_v38 }
 0x1c3   :  { %v357_v2 = vmul.f32 0.5, %v356_v58  ;;  %v425_v4 = vmul.f32 %v660_v60, %v327_v37  ;;  %v419_v15 = vmul.f32 %v905_v36, %v418_v1  ;;  %vm431_vm8 = vweird.f32 %v660_v60 }
 0x1c4   :  { %v565_v5 = vpack.c.bf16 %v495_v62, %v494_v61  ;;  %vm432_vm12 = vmor %vm430_vm11, %vm431_vm8 }
 0x1c5   :  { %v426_v6 = vmul.f32 %v660_v60, %v425_v4  ;;  %v295_v7 = vpop.xlane.xlu2 %294  ;;  %v307_v9 = vpop.xlane.xlu1 %306  ;;  %v358_v35 = vsub.f32 1.5, %v357_v2  ;;  %v423_v20 = vsel %vm422_vm9, %v905_v36, %v419_v15 }
 0x1c6   :  { %v662_v10 = vpop.eup %661  ;;  %566 = vst [vmem:[#allocation8] sm:$0xff] %v565_v5   ;;  %v917_v13 = vmax.f32 %v295_v7, 1e-24  ;;  %v919_v14 = vmax.f32 %v307_v9, 1e-24  ;;  %v502_v27 = vmul.f32 %v423_v20, %v846_v41 }
 0x1c7   :  { %v427_v17 = vmul.f32 0.5, %v426_v6  ;;  %v365_v38 = vmul.f32 %v662_v10, %v321_v49  ;;  %v359_v21 = vmul.f32 %v909_v48, %v358_v35  ;;  %vm371_vm14 = vweird.f32 %v662_v10 }
 0x1c8   :  { %663 = vrsqrt.f32 %v919_v14  ;;  %vm372_vm1 = vmor %vm370_vm0, %vm371_vm14  ;;  %vm440_vm3 = vweird.f32 %v919_v14  ;;  %vm380_vm9 = vweird.f32 %v917_v13 }
 0x1c9   :  { %v428_v18 = vsub.f32 1.5, %v427_v17  ;;  %v366_v19 = vmul.f32 %v662_v10, %v365_v38  ;;  %665 = vrsqrt.f32 %v917_v13  ;;  %v363_v32 = vsel %vm362_vm15, %v909_v48, %v359_v21 }
 0x1ca   :  { %v496_v41 = vmul.f32 %v363_v32, %v850_v44 }
 0x1cb   :  { %v429_v22 = vmul.f32 %v660_v60, %v428_v18  ;;  %v367_v23 = vmul.f32 0.5, %v366_v19 }
 0x1cd   :  { %v433_v24 = vsel %vm432_vm12, %v660_v60, %v429_v22  ;;  %v368_v25 = vsub.f32 1.5, %v367_v23  ;;  %v309_v26 = vpop.xlane.xlu2 %308 }
 0x1ce   :  { %v503_v28 = vmul.f32 %v433_v24, %v854_v47  ;;  %v329_v29 = vmax.f32 %v309_v26, 1e-24  ;;  %v664_v31 = vpop.eup %663 }
 0x1cf   :  { %v369_v33 = vmul.f32 %v662_v10, %v368_v25  ;;  %v931_v34 = vpop.eup %665  ;;  %v435_v30 = vmul.f32 %v664_v31, %v919_v14  ;;  %vm441_vm2 = vweird.f32 %v664_v31 }
 0x1d0   :  { %v585_v36 = vpack.c.bf16 %v503_v28, %v502_v27  ;;  %667 = vrsqrt.f32 %v329_v29  ;;  %v375_v42 = vmul.f32 %v931_v34, %v917_v13  ;;  %vm442_vm5 = vmor %vm440_vm3, %vm441_vm2  ;;  %vm450_vm6 = vweird.f32 %v329_v29 }
 0x1d1   :  { %v373_v37 = vsel %vm372_vm1, %v662_v10, %v369_v33  ;;  %v311_v39 = vpop.xlane.xlu0 %310  ;;  %v436_v40 = vmul.f32 %v664_v31, %v435_v30  ;;  %vm381_vm8 = vweird.f32 %v931_v34 }
 0x1d2   :  { %605 = vst [vmem:[#allocation8 + $0x20] sm:$0xff] %v585_v36   ;;  %v497_v47 = vmul.f32 %v373_v37, %v858_v50  ;;  %v938_v46 = vmax.f32 %v311_v39, 1e-24  ;;  %v376_v52 = vmul.f32 %v931_v34, %v375_v42  ;;  %vm966_vm11 = vmor %vm380_vm9, %vm381_vm8 }
 0x1d3   :  { %v437_v45 = vmul.f32 0.5, %v436_v40 }
 0x1d4   :  { %v570_v43 = vpack.c.bf16 %v497_v47, %v496_v41  ;;  %v377_v58 = vmul.f32 0.5, %v376_v52 }
 0x1d5   :  { %v297_v48 = vpop.xlane.xlu2 %296  ;;  %v438_v54 = vsub.f32 1.5, %v437_v45 }
 0x1d6   :  { %v668_v49 = vpop.eup %667  ;;  %602 = vst [vmem:[#allocation8 + $0x8] sm:$0xff] %v570_v43   ;;  %v323_v51 = vmax.f32 %v297_v48, 1e-24  ;;  %v378_v6 = vsub.f32 1.5, %v377_v58 }
 0x1d7   :  { %v445_v56 = vmul.f32 %v668_v49, %v329_v29  ;;  %v439_v60 = vmul.f32 %v664_v31, %v438_v54  ;;  %vm451_vm4 = vweird.f32 %v668_v49 }
 0x1d8   :  { %669 = vrsqrt.f32 %v323_v51  ;;  %vm452_vm7 = vmor %vm450_vm6, %vm451_vm4  ;;  %v379_v21 = vmul.f32 %v931_v34, %v378_v6  ;;  %vm390_vm12 = vweird.f32 %v323_v51 }
 0x1d9   :  { %v446_v44 = vmul.f32 %v668_v49, %v445_v56  ;;  %671 = vrsqrt.f32 %v938_v46  ;;  %v299_v50 = vpop.xlane.xlu0 %298  ;;  %v443_v7 = vsel %vm442_vm5, %v664_v31, %v439_v60  ;;  %vm460_vm5 = vweird.f32 %v938_v46 }
 0x1da   :  { %v942_v57 = vmax.f32 %v299_v50, 1e-24  ;;  %v504_v38 = vmul.f32 %v443_v7, %v862_v53  ;;  %v383_v31 = vsel %vm966_vm11, %v931_v34, %v379_v21 }
 0x1db   :  { %v447_v61 = vmul.f32 0.5, %v446_v44  ;;  %v498_v47 = vmul.f32 %v383_v31, %v864_v55 }
 0x1dc   :  { %673 = vrsqrt.f32 %v942_v57  ;;  %vm400_vm15 = vweird.f32 %v942_v57 }
 0x1dd   :  { %v448_v62 = vsub.f32 1.5, %v447_v61  ;;  %v301_v1 = vpop.xlane.xlu1 %300 }
 0x1de   :  { %v670_v2 = vpop.eup %669  ;;  %v946_v4 = vmax.f32 %v301_v1, 1e-24 }
 0x1df   :  { %v948_v5 = vpop.eup %671  ;;  %v449_v9 = vmul.f32 %v668_v49, %v448_v62  ;;  %v385_v10 = vmul.f32 %v670_v2, %v323_v51  ;;  %vm391_vm10 = vweird.f32 %v670_v2 }
 0x1e0   :  { %675 = vrsqrt.f32 %v946_v4  ;;  %v455_v19 = vmul.f32 %v948_v5, %v938_v46  ;;  %vm392_vm13 = vmor %vm390_vm12, %vm391_vm10  ;;  %vm410_vm2 = vweird.f32 %v946_v4  ;;  %vm461_vm4 = vweird.f32 %v948_v5 }
 0x1e1   :  { %v453_v15 = vsel %vm452_vm7, %v668_v49, %v449_v9  ;;  %v386_v35 = vmul.f32 %v670_v2, %v385_v10  ;;  %v315_v14 = vpop.xlane.xlu2 %314  ;;  %vm992_vm6 = vmor %vm460_vm5, %vm461_vm4 }
 0x1e2   :  { %v951_v17 = vpop.eup %673  ;;  %v505_v18 = vmul.f32 %v453_v15, %v870_v59  ;;  %v957_v20 = vmax.f32 %v315_v14, 1e-24  ;;  %v456_v28 = vmul.f32 %v948_v5, %v455_v19 }
 0x1e3   :  { %v387_v22 = vmul.f32 0.5, %v386_v35  ;;  %v395_v23 = vmul.f32 %v951_v17, %v942_v57  ;;  %vm401_vm14 = vweird.f32 %v951_v17 }
 0x1e4   :  { %v590_v24 = vpack.c.bf16 %v505_v18, %v504_v38  ;;  %677 = vrsqrt.f32 %v957_v20  ;;  %v457_v40 = vmul.f32 0.5, %v456_v28  ;;  %vm402_vm1 = vmor %vm400_vm15, %vm401_vm14  ;;  %vm480_vm11 = vweird.f32 %v957_v20 }
 0x1e5   :  { %v388_v53 = vsub.f32 1.5, %v387_v22  ;;  %v396_v59 = vmul.f32 %v951_v17, %v395_v23  ;;  %v313_v25 = vpop.xlane.xlu1 %312 }
 0x1e6   :  { %v676_v26 = vpop.eup %675  ;;  %606 = vst [vmem:[#allocation8 + $0x28] sm:$0xff] %v590_v24   ;;  %v331_v29 = vmax.f32 %v313_v25, 1e-24  ;;  %v458_v54 = vsub.f32 1.5, %v457_v40 }
 0x1e7   :  { %v389_v13 = vmul.f32 %v670_v2, %v388_v53  ;;  %v397_v32 = vmul.f32 0.5, %v396_v59  ;;  %v405_v33 = vmul.f32 %v676_v26, %v946_v4  ;;  %vm411_vm0 = vweird.f32 %v676_v26 }
 0x1e8   :  { %679 = vrsqrt.f32 %v331_v29  ;;  %vm412_vm3 = vmor %vm410_vm2, %vm411_vm0  ;;  %v459_v57 = vmul.f32 %v948_v5, %v458_v54  ;;  %vm470_vm8 = vweird.f32 %v331_v29 }
 0x1e9   :  { %v393_v36 = vsel %vm392_vm13, %v670_v2, %v389_v13  ;;  %v398_v30 = vsub.f32 1.5, %v397_v32  ;;  %v406_v37 = vmul.f32 %v676_v26, %v405_v33  ;;  %v317_v39 = vpop.xlane.xlu0 %316 }
 0x1ea   :  { %v975_v41 = vpop.eup %677  ;;  %v499_v42 = vmul.f32 %v393_v36, %v876_v0  ;;  %v333_v43 = vmax.f32 %v317_v39, 1e-24  ;;  %v463_v35 = vsel %vm992_vm6, %v948_v5, %v459_v57 }
 0x1eb   :  { %v399_v34 = vmul.f32 %v951_v17, %v398_v30  ;;  %v407_v45 = vmul.f32 0.5, %v406_v37  ;;  %v475_v48 = vmul.f32 %v975_v41, %v957_v20  ;;  %vm481_vm9 = vweird.f32 %v975_v41 }
 0x1ec   :  { %v575_v49 = vpack.c.bf16 %v499_v42, %v498_v47  ;;  %681 = vrsqrt.f32 %v333_v43  ;;  %v506_v38 = vmul.f32 %v463_v35, %v874_v63  ;;  %vm482_vm13 = vmor %vm480_vm11, %vm481_vm9  ;;  %vm490_vm14 = vweird.f32 %v333_v43 }
 0x1ed   :  { %v408_v51 = vsub.f32 1.5, %v407_v45  ;;  %v476_v55 = vmul.f32 %v975_v41, %v475_v48  ;;  %v403_v0 = vsel %vm402_vm1, %v951_v17, %v399_v34 }
 0x1ee   :  { %v680_v52 = vpop.eup %679  ;;  %603 = vst [vmem:[#allocation8 + $0x10] sm:$0xff] %v575_v49   ;;  %v500_v62 = vmul.f32 %v403_v0, %v880_v3 }
 0x1ef   :  { %v409_v56 = vmul.f32 %v676_v26, %v408_v51  ;;  %v477_v44 = vmul.f32 0.5, %v476_v55  ;;  %v465_v50 = vmul.f32 %v680_v52, %v331_v29  ;;  %vm471_vm7 = vweird.f32 %v680_v52 }
 0x1f0   :  { %vm472_vm10 = vmor %vm470_vm8, %vm471_vm7 }
 0x1f1   :  { %v413_v58 = vsel %vm412_vm3, %v676_v26, %v409_v56  ;;  %v466_v60 = vmul.f32 %v680_v52, %v465_v50  ;;  %v478_v2 = vsub.f32 1.5, %v477_v44 }
 0x1f2   :  { %v682_v61 = vpop.eup %681  ;;  %v501_v1 = vmul.f32 %v413_v58, %v886_v8 }
 0x1f3   :  { %v467_v6 = vmul.f32 0.5, %v466_v60  ;;  %v485_v4 = vmul.f32 %v682_v61, %v333_v43  ;;  %v479_v3 = vmul.f32 %v975_v41, %v478_v2  ;;  %vm491_vm12 = vweird.f32 %v682_v61 }
 0x1f4   :  { %v580_v7 = vpack.c.bf16 %v501_v1, %v500_v62  ;;  %vm492_vm15 = vmor %vm490_vm14, %vm491_vm12 }
 0x1f5   :  { %v468_v10 = vsub.f32 1.5, %v467_v6  ;;  %v486_v15 = vmul.f32 %v682_v61, %v485_v4  ;;  %v483_v5 = vsel %vm482_vm13, %v975_v41, %v479_v3 }
 0x1f6   :  { %604 = vst [vmem:[#allocation8 + $0x18] sm:$0xff] %v580_v7   ;;  %v508_v22 = vmul.f32 %v483_v5, %v890_v11 }
 0x1f7   :  { %v469_v8 = vmul.f32 %v680_v52, %v468_v10  ;;  %v487_v46 = vmul.f32 0.5, %v486_v15 }
 0x1f9   :  { %v473_v14 = vsel %vm472_vm10, %v680_v52, %v469_v8  ;;  %v488_v17 = vsub.f32 1.5, %v487_v46 }
 0x1fa   :  { %v507_v18 = vmul.f32 %v473_v14, %v892_v12 }
 0x1fb   :  { %v489_v19 = vmul.f32 %v682_v61, %v488_v17 }
 0x1fc   :  { %v595_v21 = vpack.c.bf16 %v507_v18, %v506_v38 }
 0x1fd   :  { %v493_v20 = vsel %vm492_vm15, %v682_v61, %v489_v19 }
 0x1fe   :  { %607 = vst [vmem:[#allocation8 + $0x30] sm:$0xff] %v595_v21   ;;  %v509_v63 = vmul.f32 %v493_v20, %v898_v16 }
 0x200   :  { %v600_v12 = vpack.c.bf16 %v509_v63, %v508_v22 }
 0x202   :  { %608 = vst [vmem:[#allocation8 + $0x38] sm:$0xff] %v600_v12  }
 0x203   :  { %554 = dma.vmem_to_hbm [thread:$0]  %s547_s10, 1024, %s549_s13, [#allocation4], %s791_s14, %s791_s14, %s792_s15  }
 0x204   :  { %783 = dma.done.wait [#allocation4], 1024  }
 0x205   :  { %784 = vsyncadd [#allocation4], 4294966272 }
 0x206   :  { %559 = vsyncpa [#allocation3], 1 }
 0x207   :  { %560 = vsyncpa [#allocation6], 1 }
 0x208   :  { %561 = vsyncpa [#allocation4], 1 }

</bundles_post_ra>
